<compile_context>
chip_gen: v7x
topology: tpu7x:2x2x1
jax: 0.10.0
libtpu: 0.0.40
codegen_flags: <defaults>
</compile_context>

<pallas_src>
import functools

import jax
import jax.numpy as jnp
from jax.experimental import pallas as pl
from jax.experimental.pallas import tpu as pltpu


def _round_up(x, m):
    return (x + m - 1) // m * m


def _cdiv(a, b):
    return (a + b - 1) // b


def _tpu_generation_and_vmem():
    """Best-effort (generation tag, physical VMEM bytes per TensorCore)."""
    gen = ""
    try:
        kind = jax.devices()[0].device_kind.lower()
        for g in ("v7", "v6", "v5", "v4"):
            if g in kind:
                gen = g
                break
    except Exception:
        pass
    vmem = None
    try:
        info = pltpu.get_tpu_info()
        cap = int(getattr(info, "vmem_capacity_bytes", 0) or 0)
        if cap > 0:
            vmem = cap
    except Exception:
        pass
    if vmem is None:
        # v7x has 64 MiB per TensorCore; v4/v5e/v6e have 128 MiB.
        vmem = (64 << 20) if (gen == "v7" or gen == "") else (128 << 20)
    return gen, vmem


# --------------------------------------------------------------------------
# Kernels
# --------------------------------------------------------------------------
def _rnd_resident_kernel(rgb_ref, dep_ref, w1r_ref, w1d_ref, b1_ref,
                         w2_ref, b2_ref, out_ref, acc_ref):
    """Path A: full fused W1 resident in VMEM; one grid step per batch tile.

    f32 activations are cast to bf16 on the VPU right before the MXU; layer-1
    accumulates in an explicit f32 VMEM scratch; layer 2 is a single fused
    block-diagonal (2H,2O) matmul producing the lane-dense [target|predictor]
    output slab.
    """
    acc_ref[...] = jnp.dot(rgb_ref[...].astype(jnp.bfloat16), w1r_ref[...],
                           preferred_element_type=jnp.float32)
    acc_ref[...] += jnp.dot(dep_ref[...].astype(jnp.bfloat16), w1d_ref[...],
                            preferred_element_type=jnp.float32)
    h = jnp.maximum(acc_ref[...] + b1_ref[...], 0.0).astype(jnp.bfloat16)
    out = jnp.dot(h, w2_ref[...], preferred_element_type=jnp.float32) + b2_ref[...]
    out_ref[...] = out.astype(out_ref.dtype)


def _rnd_streamed_kernel(rgb_ref, dep_ref, w1r_ref, w1d_ref, b1_ref,
                         w2_ref, b2_ref, out_ref, acc_ref):
    """Path B (fallback, W1 too large for VMEM): grid = (k chunks, batch tiles)
    with the reduction OUTER so each W1 chunk is DMA'd once and reused across
    every batch tile; per-batch-tile f32 accumulator bank in VMEM scratch."""
    k = pl.program_id(0)        # reduction over flattened-pixel chunks (outer)
    i = pl.program_id(1)        # batch tile (inner)

    part = jnp.dot(rgb_ref[...].astype(jnp.bfloat16), w1r_ref[...],
                   preferred_element_type=jnp.float32)
    part = part + jnp.dot(dep_ref[...].astype(jnp.bfloat16), w1d_ref[...],
                          preferred_element_type=jnp.float32)

    @pl.when(k == 0)
    def _():
        acc_ref[i] = part

    @pl.when(k > 0)
    def _():
        acc_ref[i] = acc_ref[i] + part

    @pl.when(k == pl.num_programs(0) - 1)
    def _():
        h = jnp.maximum(acc_ref[i] + b1_ref[...], 0.0).astype(jnp.bfloat16)
        out = jnp.dot(h, w2_ref[...],
                      preferred_element_type=jnp.float32) + b2_ref[...]
        out_ref[...] = out.astype(out_ref.dtype)


# --------------------------------------------------------------------------
# Parameters
# --------------------------------------------------------------------------
def init_params(key, in_dim, hidden, out_dim):
    """fp32 'torch-layout' weights (no checkpoint loading).  W1 rows follow the
    channel-last rgb|depth concat + row-major flatten order of the module."""
    ks = jax.random.split(key, 8)
    s1 = 1.0 / jnp.sqrt(in_dim)
    s2 = 1.0 / jnp.sqrt(hidden)
    return {
        # target net (frozen random net)
        "tw1": jax.random.normal(ks[0], (in_dim, hidden), jnp.float32) * s1,
        "tb1": jax.random.normal(ks[1], (1, hidden), jnp.float32) * 0.01,
        "tw2": jax.random.normal(ks[2], (hidden, out_dim), jnp.float32) * s2,
        "tb2": jax.random.normal(ks[3], (1, out_dim), jnp.float32) * 0.01,
        # predictor net
        "pw1": jax.random.normal(ks[4], (in_dim, hidden), jnp.float32) * s1,
        "pb1": jax.random.normal(ks[5], (1, hidden), jnp.float32) * 0.01,
        "pw2": jax.random.normal(ks[6], (hidden, out_dim), jnp.float32) * s2,
        "pb2": jax.random.normal(ks[7], (1, out_dim), jnp.float32) * 0.01,
    }


def prepare_params(params, h_img, w_img, n_rgb, n_depth):
    """One-time weight prep (per weight update, not per step):

      * fuse target+predictor layer 1 column-wise into [D, 2H_p] (H padded to a
        multiple of 128 -> lane-aligned, no in-kernel hidden slicing),
      * permute W1 rows from the interleaved (pixel, rgb|depth) torch layout
        into separate rgb / depth slabs, zero-pad each slab's row count to a
        multiple of 128,
      * build the block-diagonal fused layer-2 weight [2H_p, 2O_p] and fused
        biases, cast matmul operands to bf16.
    """
    hidden = params["tw1"].shape[1]
    out_dim = params["tw2"].shape[1]
    h_p = _round_up(hidden, 128)
    o_p = _round_up(out_dim, 128)

    hw = h_img * w_img
    c = n_rgb + n_depth
    pix = jnp.arange(hw)
    idx_rgb = (pix[:, None] * c + jnp.arange(n_rgb)[None, :]).reshape(-1)
    idx_dep = (pix[:, None] * c + n_rgb + jnp.arange(n_depth)[None, :]).reshape(-1)

    d = hw * c
    # Fused layer 1: columns [0:hidden] = target, [h_p:h_p+hidden] = predictor.
    w1 = jnp.zeros((d, 2 * h_p), jnp.float32)
    w1 = w1.at[:, :hidden].set(params["tw1"])
    w1 = w1.at[:, h_p:h_p + hidden].set(params["pw1"])
    b1 = jnp.zeros((1, 2 * h_p), jnp.float32)
    b1 = b1.at[:, :hidden].set(params["tb1"])
    b1 = b1.at[:, h_p:h_p + hidden].set(params["pb1"])

    # Fused block-diagonal layer 2.
    w2 = jnp.zeros((2 * h_p, 2 * o_p), jnp.float32)
    w2 = w2.at[:hidden, :out_dim].set(params["tw2"])
    w2 = w2.at[h_p:h_p + hidden, o_p:o_p + out_dim].set(params["pw2"])
    b2 = jnp.zeros((1, 2 * o_p), jnp.float32)
    b2 = b2.at[:, :out_dim].set(params["tb2"])
    b2 = b2.at[:, o_p:o_p + out_dim].set(params["pb2"])

    d_rgb = hw * n_rgb
    d_dep = hw * n_depth
    d_rgb_p = _round_up(d_rgb, 128)
    d_dep_p = _round_up(d_dep, 128)
    w1_rgb = jnp.pad(w1[idx_rgb], ((0, d_rgb_p - d_rgb), (0, 0)))
    w1_dep = jnp.pad(w1[idx_dep], ((0, d_dep_p - d_dep), (0, 0)))

    return {
        "w1_rgb": w1_rgb.astype(jnp.bfloat16),   # [D_rgb_p, 2H_p]
        "w1_dep": w1_dep.astype(jnp.bfloat16),   # [D_dep_p, 2H_p]
        "b1": b1,                                # [1, 2H_p] f32
        "w2": w2.astype(jnp.bfloat16),           # [2H_p, 2O_p] block-diag
        "b2": b2,                                # [1, 2O_p] f32
    }


# --------------------------------------------------------------------------
# Forward
# --------------------------------------------------------------------------
def rnd_forward(rgb, depth, prepped, *, out_dim):
    """rgb [B,H,W,n_rgb], depth [B,H,W,n_depth]
    -> (target_feat [B,O] f32, pred_feat [B,O] f32, pred_error [B,1] f32)."""
    # TODO(synk): obs spaces with only rgb or only depth would drop the missing
    #             stream; both are assumed present here (as in the demo).
    B = rgb.shape[0]
    hw = rgb.shape[1] * rgb.shape[2]
    n_rgb, n_depth = rgb.shape[3], depth.shape[3]
    d_rgb, d_dep = hw * n_rgb, hw * n_depth
    d_rgb_p, two_h_p = prepped["w1_rgb"].shape
    d_dep_p = prepped["w1_dep"].shape[0]
    two_o_p = prepped["w2"].shape[1]
    o_p = two_o_p // 2

    gen, vmem_phys = _tpu_generation_and_vmem()
    budget = int(vmem_phys * 0.75)

    # ---- batch tiling ----------------------------------------------------
    b_pad0 = _round_up(max(B, 8), 8)
    tb = min(256 if gen in ("v6", "v7") else 128, b_pad0)
    if gen == "v7" and b_pad0 // tb < 2 and b_pad0 >= 16:
        # Give both v7x TensorCores at least one "parallel" batch tile.
        tb = _round_up(_cdiv(b_pad0, 2), 8)

    fixed = (2 * two_h_p * two_o_p * 2          # fused W2 (bf16, 2 buffers)
             + 2 * (two_h_p + two_o_p) * 4)     # biases  (f32, 2 buffers)

    def _path_a_bytes(t):
        return (fixed
                + 2 * t * (d_rgb_p + d_dep_p) * 4        # f32 activation streams
                + 2 * (d_rgb_p + d_dep_p) * two_h_p * 2  # resident W1 (2 bufs, safe)
                + 2 * t * two_o_p * 4                    # output tiles
                + t * two_h_p * 4                        # f32 accumulator scratch
                + 2 * t * two_h_p * 4 + t * two_o_p * 4)  # temporaries allowance

    def _cost(d_tot, b_tot):
        flops = 2 * b_tot * (d_tot * two_h_p + two_h_p * two_o_p)
        bytes_accessed = int(b_tot * d_tot * 4
                             + d_tot * two_h_p * 2
                             + two_h_p * two_o_p * 2
                             + (two_h_p + two_o_p) * 4
                             + b_tot * two_o_p * 4)
        return pl.CostEstimate(flops=flops, transcendentals=0,
                               bytes_accessed=bytes_accessed)

    # ---- path A: keep fused W1 fully resident in VMEM --------------------
    tb_a = None
    t = tb
    while True:
        if _path_a_bytes(t) <= budget:
            tb_a = t
            break
        if t <= 8:
            break
        t = max(8, _round_up(t // 2, 8))

    if tb_a is not None:
        tb = tb_a
        b_pad = _round_up(b_pad0, tb)
        n_bt = b_pad // tb

        rgb_flat = rgb.astype(jnp.float32).reshape(B, d_rgb)
        dep_flat = depth.astype(jnp.float32).reshape(B, d_dep)
        if b_pad != B or d_rgb_p != d_rgb:
            rgb_flat = jnp.pad(rgb_flat, ((0, b_pad - B), (0, d_rgb_p - d_rgb)))
        if b_pad != B or d_dep_p != d_dep:
            dep_flat = jnp.pad(dep_flat, ((0, b_pad - B), (0, d_dep_p - d_dep)))

        est = _path_a_bytes(tb)
        vmem_limit = int(max(32 << 20,
                             min(vmem_phys - (16 << 20), est + (8 << 20))))

        out = pl.pallas_call(
            _rnd_resident_kernel,
            out_shape=jax.ShapeDtypeStruct((b_pad, two_o_p), jnp.float32),
            grid_spec=pltpu.PrefetchScalarGridSpec(
                num_scalar_prefetch=0,
                grid=(n_bt,),
                in_specs=[
                    pl.BlockSpec((tb, d_rgb_p), lambda i: (i, 0)),        # rgb tile
                    pl.BlockSpec((tb, d_dep_p), lambda i: (i, 0)),        # depth tile
                    pl.BlockSpec((d_rgb_p, two_h_p), lambda i: (0, 0)),   # W1 rgb (resident)
                    pl.BlockSpec((d_dep_p, two_h_p), lambda i: (0, 0)),   # W1 depth (resident)
                    pl.BlockSpec((1, two_h_p), lambda i: (0, 0)),         # b1
                    pl.BlockSpec((two_h_p, two_o_p), lambda i: (0, 0)),   # fused W2
                    pl.BlockSpec((1, two_o_p), lambda i: (0, 0)),         # b2
                ],
                out_specs=pl.BlockSpec((tb, two_o_p), lambda i: (i, 0)),
                scratch_shapes=[pltpu.VMEM((tb, two_h_p), jnp.float32)]),
            compiler_params=pltpu.CompilerParams(
                dimension_semantics=("parallel",),
                vmem_limit_bytes=vmem_limit),
            cost_estimate=_cost(d_rgb_p + d_dep_p, b_pad),
        )(rgb_flat, dep_flat, prepped["w1_rgb"], prepped["w1_dep"],
          prepped["b1"], prepped["w2"], prepped["b2"])

    else:
        # ---- path B: stream W1 chunks, reduction OUTER, batch INNER -------
        chosen = None
        t = tb
        while chosen is None:
            n_bt = _round_up(b_pad0, t) // t
            for kp in range(2, 1025):
                tk_r = _round_up(_cdiv(d_rgb_p, kp), 128)
                tk_d = _round_up(_cdiv(d_dep_p, kp), 128)
                per = (fixed
                       + 2 * t * (tk_r + tk_d) * 4
                       + 2 * (tk_r + tk_d) * two_h_p * 2
                       + 2 * t * two_o_p * 4
                       + n_bt * t * two_h_p * 4           # accumulator bank
                       + 2 * t * two_h_p * 4 + t * two_o_p * 4)
                if per <= budget:
                    chosen = (t, kp, tk_r, tk_d)
                    break
            if chosen is None:
                if t <= 8:
                    kp = 1024
                    chosen = (t, kp, _round_up(_cdiv(d_rgb_p, kp), 128),
                              _round_up(_cdiv(d_dep_p, kp), 128))
                else:
                    t = max(8, _round_up(t // 2, 8))

        tb, kp, tk_r, tk_d = chosen
        b_pad = _round_up(b_pad0, tb)
        n_bt = b_pad // tb
        d_rgb_t = tk_r * kp
        d_dep_t = tk_d * kp

        rgb_flat = rgb.astype(jnp.float32).reshape(B, d_rgb)
        dep_flat = depth.astype(jnp.float32).reshape(B, d_dep)
        if b_pad != B or d_rgb_t != d_rgb:
            rgb_flat = jnp.pad(rgb_flat, ((0, b_pad - B), (0, d_rgb_t - d_rgb)))
        if b_pad != B or d_dep_t != d_dep:
            dep_flat = jnp.pad(dep_flat, ((0, b_pad - B), (0, d_dep_t - d_dep)))
        # TODO(synk): this per-call W1 zero-pad (fallback path only) could be
        #             hoisted into prepare_params if kp were fixed up front.
        w1r, w1d = prepped["w1_rgb"], prepped["w1_dep"]
        if d_rgb_t != d_rgb_p:
            w1r = jnp.pad(w1r, ((0, d_rgb_t - d_rgb_p), (0, 0)))
        if d_dep_t != d_dep_p:
            w1d = jnp.pad(w1d, ((0, d_dep_t - d_dep_p), (0, 0)))

        per = (fixed + 2 * tb * (tk_r + tk_d) * 4
               + 2 * (tk_r + tk_d) * two_h_p * 2
               + 2 * tb * two_o_p * 4 + n_bt * tb * two_h_p * 4
               + 2 * tb * two_h_p * 4 + tb * two_o_p * 4)
        vmem_limit = int(max(32 << 20,
                             min(vmem_phys - (16 << 20), per + (8 << 20))))

        out = pl.pallas_call(
            _rnd_streamed_kernel,
            out_shape=jax.ShapeDtypeStruct((b_pad, two_o_p), jnp.float32),
            grid_spec=pltpu.PrefetchScalarGridSpec(
                num_scalar_prefetch=0,
                grid=(kp, n_bt),
                in_specs=[
                    pl.BlockSpec((tb, tk_r), lambda k, i: (i, k)),
                    pl.BlockSpec((tb, tk_d), lambda k, i: (i, k)),
                    pl.BlockSpec((tk_r, two_h_p), lambda k, i: (k, 0)),   # W1 chunk
                    pl.BlockSpec((tk_d, two_h_p), lambda k, i: (k, 0)),   # (reused over i)
                    pl.BlockSpec((1, two_h_p), lambda k, i: (0, 0)),
                    pl.BlockSpec((two_h_p, two_o_p), lambda k, i: (0, 0)),
                    pl.BlockSpec((1, two_o_p), lambda k, i: (0, 0)),
                ],
                out_specs=pl.BlockSpec((tb, two_o_p), lambda k, i: (i, 0)),
                scratch_shapes=[pltpu.VMEM((n_bt, tb, two_h_p), jnp.float32)]),
            compiler_params=pltpu.CompilerParams(
                dimension_semantics=("arbitrary", "arbitrary"),
                vmem_limit_bytes=vmem_limit),
            cost_estimate=_cost(d_rgb_t + d_dep_t, b_pad),
        )(rgb_flat, dep_flat, w1r, w1d,
          prepped["b1"], prepped["w2"], prepped["b2"])

    tgt = out[:B, :out_dim]
    pred = out[:B, o_p:o_p + out_dim]
    # Tiny per-row reduction done in XLA from the lane-dense kernel outputs.
    err = jnp.sum(jnp.square(pred - tgt), axis=-1, keepdims=True)
    return tgt, pred, err


if __name__ == "__main__":
    # Small shapes consistent with the module: rgb (H,W,3), depth (H,W,1).
    B, h_img, w_img = 2, 16, 16
    n_rgb, n_depth = 3, 1            # self._n_input_rgb / self._n_input_depth
    hidden, output_size = 128, 128   # embedding vector size

    key = jax.random.PRNGKey(0)
    k_rgb, k_depth, k_param = jax.random.split(key, 3)

    rgb = jax.random.uniform(k_rgb, (B, h_img, w_img, n_rgb), jnp.float32)
    depth = jax.random.uniform(k_depth, (B, h_img, w_img, n_depth), jnp.float32)

    in_dim = h_img * w_img * (n_rgb + n_depth)
    params = init_params(k_param, in_dim, hidden, output_size)
    prepped = prepare_params(params, h_img, w_img, n_rgb, n_depth)

    fwd = jax.jit(functools.partial(rnd_forward, out_dim=output_size))
    tgt, pred, err = fwd(rgb, depth, prepped)
    jax.block_until_ready((tgt, pred, err))

    # Sanity check vs plain-JAX fp32 reference (kernel runs in bf16 -> loose tol).
    x = jnp.concatenate([rgb, depth], axis=-1).reshape(B, -1)
    t_ref = (jnp.maximum(x @ params["tw1"] + params["tb1"], 0.0)
             @ params["tw2"] + params["tb2"])
    p_ref = (jnp.maximum(x @ params["pw1"] + params["pb1"], 0.0)
             @ params["pw2"] + params["pb2"])
    e_ref = jnp.sum((p_ref - t_ref) ** 2, axis=-1, keepdims=True)

    assert tgt.shape == (B, output_size) and pred.shape == (B, output_size)
    assert err.shape == (B, 1)
    assert jnp.allclose(tgt, t_ref, rtol=5e-2, atol=0.25), "target mismatch"
    assert jnp.allclose(pred, p_ref, rtol=5e-2, atol=0.25), "predictor mismatch"
    assert jnp.allclose(err, e_ref, rtol=1e-1, atol=3.0), "pred-error mismatch"

    print("KERNEL_OK")
</pallas_src>

<mosaic_0001>
module attributes {stable_mosaic.version = 11 : i64} {
  func.func @_rnd_resident_kernel(%arg0: i32, %arg1: memref<8x768xf32, #tpu.memory_space<vmem>>, %arg2: memref<8x256xf32, #tpu.memory_space<vmem>>, %arg3: memref<768x256xbf16, #tpu.memory_space<vmem>>, %arg4: memref<256x256xbf16, #tpu.memory_space<vmem>>, %arg5: memref<1x256xf32, #tpu.memory_space<vmem>>, %arg6: memref<256x256xbf16, #tpu.memory_space<vmem>>, %arg7: memref<1x256xf32, #tpu.memory_space<vmem>>, %arg8: memref<8x256xf32, #tpu.memory_space<vmem>>, %arg9: memref<8x256xf32, #tpu.memory_space<vmem>>) attributes {dimension_semantics = [#tpu.dimension_semantics<parallel>], iteration_bounds = array<i64: 1>, scalar_prefetch = 0 : i64, scratch_operands = 1 : i64, tpu.core_type = #tpu.core_type<tc>, window_params = [{transform_indices = @transform_0, window_bounds = array<i64: 8, 768>}, {transform_indices = @transform_1, window_bounds = array<i64: 8, 256>}, {pipeline_mode = #tpu.pipeline_mode<synchronous>, transform_indices = @transform_2, window_bounds = array<i64: 768, 256>}, {pipeline_mode = #tpu.pipeline_mode<synchronous>, transform_indices = @transform_3, window_bounds = array<i64: 256, 256>}, {pipeline_mode = #tpu.pipeline_mode<synchronous>, transform_indices = @transform_4, window_bounds = array<i64: 1, 256>}, {pipeline_mode = #tpu.pipeline_mode<synchronous>, transform_indices = @transform_5, window_bounds = array<i64: 256, 256>}, {pipeline_mode = #tpu.pipeline_mode<synchronous>, transform_indices = @transform_6, window_bounds = array<i64: 1, 256>}, {transform_indices = @transform_7, window_bounds = array<i64: 8, 256>}]} {
    %c0 = arith.constant 0 : index
    %c0_0 = arith.constant 0 : index
    %0 = vector.load %arg1[%c0, %c0_0] : memref<8x768xf32, #tpu.memory_space<vmem>>, vector<8x768xf32>
    %1 = arith.truncf %0 : vector<8x768xf32> to vector<8x768xbf16>
    %c0_1 = arith.constant 0 : index
    %c0_2 = arith.constant 0 : index
    %2 = vector.load %arg3[%c0_1, %c0_2] : memref<768x256xbf16, #tpu.memory_space<vmem>>, vector<768x256xbf16>
    %cst = arith.constant dense<0.000000e+00> : vector<8x256xf32>
    %3 = tpu.matmul %1, %2, %cst {dimension_numbers = #tpu.dot_dimension_numbers<[1], [0], [0], [1], [0, 0, 1, 1], [], []>} : vector<8x768xbf16>, vector<768x256xbf16>, vector<8x256xf32> -> vector<8x256xf32>
    %c0_3 = arith.constant 0 : index
    %c0_4 = arith.constant 0 : index
    %4 = vector.load %arg9[%c0_3, %c0_4] : memref<8x256xf32, #tpu.memory_space<vmem>>, vector<8x256xf32>
    tpu.vector_store %arg9[%c0_3, %c0_4], %3 {strides = array<i32>} : memref<8x256xf32, #tpu.memory_space<vmem>>, vector<8x256xf32>,
    %c0_5 = arith.constant 0 : index
    %c0_6 = arith.constant 0 : index
    %5 = vector.load %arg9[%c0_5, %c0_6] : memref<8x256xf32, #tpu.memory_space<vmem>>, vector<8x256xf32>
    %c0_7 = arith.constant 0 : index
    %c0_8 = arith.constant 0 : index
    %6 = vector.load %arg2[%c0_7, %c0_8] : memref<8x256xf32, #tpu.memory_space<vmem>>, vector<8x256xf32>
    %7 = arith.truncf %6 : vector<8x256xf32> to vector<8x256xbf16>
    %c0_9 = arith.constant 0 : index
    %c0_10 = arith.constant 0 : index
    %8 = vector.load %arg4[%c0_9, %c0_10] : memref<256x256xbf16, #tpu.memory_space<vmem>>, vector<256x256xbf16>
    %cst_11 = arith.constant dense<0.000000e+00> : vector<8x256xf32>
    %9 = tpu.matmul %7, %8, %cst_11 {dimension_numbers = #tpu.dot_dimension_numbers<[1], [0], [0], [1], [0, 0, 1, 1], [], []>} : vector<8x256xbf16>, vector<256x256xbf16>, vector<8x256xf32> -> vector<8x256xf32>
    %10 = arith.addf %5, %9 : vector<8x256xf32>
    %c0_12 = arith.constant 0 : index
    %c0_13 = arith.constant 0 : index
    %11 = vector.load %arg9[%c0_12, %c0_13] : memref<8x256xf32, #tpu.memory_space<vmem>>, vector<8x256xf32>
    tpu.vector_store %arg9[%c0_12, %c0_13], %10 {strides = array<i32>} : memref<8x256xf32, #tpu.memory_space<vmem>>, vector<8x256xf32>,
    %c0_14 = arith.constant 0 : index
    %c0_15 = arith.constant 0 : index
    %12 = vector.load %arg9[%c0_14, %c0_15] : memref<8x256xf32, #tpu.memory_space<vmem>>, vector<8x256xf32>
    %c0_16 = arith.constant 0 : index
    %c0_17 = arith.constant 0 : index
    %13 = vector.load %arg5[%c0_16, %c0_17] : memref<1x256xf32, #tpu.memory_space<vmem>>, vector<1x256xf32>
    %14 = vector.broadcast %13 : vector<1x256xf32> to vector<8x256xf32>
    %15 = arith.addf %12, %14 : vector<8x256xf32>
    %cst_18 = arith.constant 0.000000e+00 : f32
    %16 = vector.broadcast %cst_18 : f32 to vector<8x256xf32>
    %17 = arith.maximumf %15, %16 : vector<8x256xf32>
    %18 = arith.truncf %17 : vector<8x256xf32> to vector<8x256xbf16>
    %c0_19 = arith.constant 0 : index
    %c0_20 = arith.constant 0 : index
    %19 = vector.load %arg6[%c0_19, %c0_20] : memref<256x256xbf16, #tpu.memory_space<vmem>>, vector<256x256xbf16>
    %cst_21 = arith.constant dense<0.000000e+00> : vector<8x256xf32>
    %20 = tpu.matmul %18, %19, %cst_21 {dimension_numbers = #tpu.dot_dimension_numbers<[1], [0], [0], [1], [0, 0, 1, 1], [], []>} : vector<8x256xbf16>, vector<256x256xbf16>, vector<8x256xf32> -> vector<8x256xf32>
    %c0_22 = arith.constant 0 : index
    %c0_23 = arith.constant 0 : index
    %21 = vector.load %arg7[%c0_22, %c0_23] : memref<1x256xf32, #tpu.memory_space<vmem>>, vector<1x256xf32>
    %22 = vector.broadcast %21 : vector<1x256xf32> to vector<8x256xf32>
    %23 = arith.addf %20, %22 : vector<8x256xf32>
    %c0_24 = arith.constant 0 : index
    %c0_25 = arith.constant 0 : index
    %24 = vector.load %arg8[%c0_24, %c0_25] : memref<8x256xf32, #tpu.memory_space<vmem>>, vector<8x256xf32>
    tpu.vector_store %arg8[%c0_24, %c0_25], %23 {strides = array<i32>} : memref<8x256xf32, #tpu.memory_space<vmem>>, vector<8x256xf32>,
    return
  }
  func.func @transform_0(%arg0: i32) -> (i32, i32) {
    %c0_i32 = arith.constant 0 : i32
    %c0_i32_0 = arith.constant 0 : i32
    return %arg0, %c0_i32 : i32, i32
  }
  func.func @transform_1(%arg0: i32) -> (i32, i32) {
    %c0_i32 = arith.constant 0 : i32
    %c0_i32_0 = arith.constant 0 : i32
    return %arg0, %c0_i32 : i32, i32
  }
  func.func @transform_2(%arg0: i32) -> (i32, i32) {
    %c0_i32 = arith.constant 0 : i32
    %c0_i32_0 = arith.constant 0 : i32
    %c0_i32_1 = arith.constant 0 : i32
    return %c0_i32, %c0_i32_0 : i32, i32
  }
  func.func @transform_3(%arg0: i32) -> (i32, i32) {
    %c0_i32 = arith.constant 0 : i32
    %c0_i32_0 = arith.constant 0 : i32
    %c0_i32_1 = arith.constant 0 : i32
    return %c0_i32, %c0_i32_0 : i32, i32
  }
  func.func @transform_4(%arg0: i32) -> (i32, i32) {
    %c0_i32 = arith.constant 0 : i32
    %c0_i32_0 = arith.constant 0 : i32
    %c0_i32_1 = arith.constant 0 : i32
    return %c0_i32, %c0_i32_0 : i32, i32
  }
  func.func @transform_5(%arg0: i32) -> (i32, i32) {
    %c0_i32 = arith.constant 0 : i32
    %c0_i32_0 = arith.constant 0 : i32
    %c0_i32_1 = arith.constant 0 : i32
    return %c0_i32, %c0_i32_0 : i32, i32
  }
  func.func @transform_6(%arg0: i32) -> (i32, i32) {
    %c0_i32 = arith.constant 0 : i32
    %c0_i32_0 = arith.constant 0 : i32
    %c0_i32_1 = arith.constant 0 : i32
    return %c0_i32, %c0_i32_0 : i32, i32
  }
  func.func @transform_7(%arg0: i32) -> (i32, i32) {
    %c0_i32 = arith.constant 0 : i32
    %c0_i32_0 = arith.constant 0 : i32
    return %arg0, %c0_i32 : i32, i32
  }
}

</mosaic_0001>

<bundles_post_ra>
// kernel: rnd_forward.1
= control target key start
LH: loop header
LB: loop body
LE: loop exit
PB: predicated region body
PF: predicated region fallthrough
CT: control target
= control target key end

     0   :  { %s2209_s2 = inlined_call_operand.vmem [shape: bf16[768,256], index: 2, kind: input, shape index: {}]   ;;  %s2210_s0 = inlined_call_operand.vmem [shape: f32[8,768], index: 0, kind: input, shape index: {}]   ;;  %s2211_s3 = inlined_call_operand.vmem [shape: bf16[256,256], index: 3, kind: input, shape index: {}]   ;;  %s2212_s1 = inlined_call_operand.vmem [shape: f32[8,256], index: 1, kind: input, shape index: {}]   ;;  %s2213_s5 = inlined_call_operand.vmem [shape: bf16[256,256], index: 5, kind: input, shape index: {}]   ;;  %s2214_s4 = inlined_call_operand.vmem [shape: f32[1,256], index: 4, kind: input, shape index: {}]   ;;  %s2215_s6 = inlined_call_operand.vmem [shape: f32[1,256], index: 6, kind: input, shape index: {}]   ;;  %s2216_s7 = inlined_call_operand.vmem [shape: f32[8,256], index: 7, kind: output, shape index: {}]  }
   0x1   :  { %v1413_v0 = vld [vmem:[%s2209_s2 + $0x4] ss:$8 sps:$4 sm:$0xff]   ;;  %v1417_v2 = vld [vmem:[%s2209_s2] ss:$8 sps:$4 sm:$0xff]   ;;  %v1419_v4 = vld [vmem:[%s2209_s2 + $0x14] ss:$8 sps:$4 sm:$0xff]  }
   0x2   :  { %v1415_v1 = vld [vmem:[%s2209_s2 + $0x104] ss:$8 sps:$4 sm:$0xff]   ;;  %614 = vmatprep.subr.bf16.mxu0 %v1413_v0  ;;  %v1418_v3 = vld [vmem:[%s2209_s2 + $0x100] ss:$8 sps:$4 sm:$0xff]   ;;  %v1421_v5 = vld [vmem:[%s2209_s2 + $0x114] ss:$8 sps:$4 sm:$0xff]  }
   0x3   :  { %655 = vmatprep.subr.bf16.mxu1 %v1415_v1  ;;  %615 = vmatpush1.bf16.msra.mxu0 %v1417_v2  ;;  %v1423_v6 = vld [vmem:[%s2209_s2 + $0x10] ss:$8 sps:$4 sm:$0xff]   ;;  %v1425_v8 = vld [vmem:[%s2209_s2 + $0x24] ss:$8 sps:$4 sm:$0xff]   ;;  %v1429_v10 = vld [vmem:[%s2209_s2 + $0x20] ss:$8 sps:$4 sm:$0xff]  }
   0x4   :  { %656 = vmatpush1.bf16.msra.mxu1 %v1418_v3  ;;  %616 = vmatprep.subr.bf16.mxu0 %v1419_v4  ;;  %v1424_v7 = vld [vmem:[%s2209_s2 + $0x110] ss:$8 sps:$4 sm:$0xff]   ;;  %v1427_v9 = vld [vmem:[%s2209_s2 + $0x124] ss:$8 sps:$4 sm:$0xff]   ;;  %v1430_v11 = vld [vmem:[%s2209_s2 + $0x120] ss:$8 sps:$4 sm:$0xff]  }
   0x5   :  { %657 = vmatprep.subr.bf16.mxu1 %v1421_v5  ;;  %v1431_v12 = vld [vmem:[%s2209_s2 + $0x34] ss:$8 sps:$4 sm:$0xff]   ;;  %v1435_v14 = vld [vmem:[%s2209_s2 + $0x30] ss:$8 sps:$4 sm:$0xff]   ;;  %v1437_v16 = vld [vmem:[%s2209_s2 + $0x44] ss:$8 sps:$4 sm:$0xff]  }
   0x6   :  { %v1433_v13 = vld [vmem:[%s2209_s2 + $0x134] ss:$8 sps:$4 sm:$0xff]   ;;  %v1436_v15 = vld [vmem:[%s2209_s2 + $0x130] ss:$8 sps:$4 sm:$0xff]   ;;  %v1439_v17 = vld [vmem:[%s2209_s2 + $0x144] ss:$8 sps:$4 sm:$0xff]  }
   0x7   :  { %617 = vmatpush1.bf16.msra.mxu0 %v1423_v6  ;;  %v1441_v18 = vld [vmem:[%s2209_s2 + $0x40] ss:$8 sps:$4 sm:$0xff]   ;;  %v1443_v20 = vld [vmem:[%s2209_s2 + $0x54] ss:$8 sps:$4 sm:$0xff]   ;;  %v1447_v22 = vld [vmem:[%s2209_s2 + $0x50] ss:$8 sps:$4 sm:$0xff]  }
   0x8   :  { %658 = vmatpush1.bf16.msra.mxu1 %v1424_v7  ;;  %618 = vmatprep.subr.bf16.mxu0 %v1425_v8  ;;  %v1442_v19 = vld [vmem:[%s2209_s2 + $0x140] ss:$8 sps:$4 sm:$0xff]   ;;  %v1445_v21 = vld [vmem:[%s2209_s2 + $0x154] ss:$8 sps:$4 sm:$0xff]   ;;  %v1448_v23 = vld [vmem:[%s2209_s2 + $0x150] ss:$8 sps:$4 sm:$0xff]  }
   0x9   :  { %659 = vmatprep.subr.bf16.mxu1 %v1427_v9  ;;  %v1449_v24 = vld [vmem:[%s2209_s2 + $0x64] ss:$8 sps:$4 sm:$0xff]   ;;  %v1453_v26 = vld [vmem:[%s2209_s2 + $0x60] ss:$8 sps:$4 sm:$0xff]   ;;  %v1455_v28 = vld [vmem:[%s2209_s2 + $0x74] ss:$8 sps:$4 sm:$0xff]  }
   0xa   :  { %v1451_v25 = vld [vmem:[%s2209_s2 + $0x164] ss:$8 sps:$4 sm:$0xff]   ;;  %v1454_v27 = vld [vmem:[%s2209_s2 + $0x160] ss:$8 sps:$4 sm:$0xff]   ;;  %v1457_v29 = vld [vmem:[%s2209_s2 + $0x174] ss:$8 sps:$4 sm:$0xff]  }
   0xb   :  { %619 = vmatpush1.bf16.msra.mxu0 %v1429_v10  ;;  %v1459_v30 = vld [vmem:[%s2209_s2 + $0x70] ss:$8 sps:$4 sm:$0xff]   ;;  %v1461_v32 = vld [vmem:[%s2209_s2 + $0x84] ss:$8 sps:$4 sm:$0xff]   ;;  %v1465_v34 = vld [vmem:[%s2209_s2 + $0x80] ss:$8 sps:$4 sm:$0xff]  }
   0xc   :  { %660 = vmatpush1.bf16.msra.mxu1 %v1430_v11  ;;  %620 = vmatprep.subr.bf16.mxu0 %v1431_v12  ;;  %v1460_v31 = vld [vmem:[%s2209_s2 + $0x170] ss:$8 sps:$4 sm:$0xff]   ;;  %v1463_v33 = vld [vmem:[%s2209_s2 + $0x184] ss:$8 sps:$4 sm:$0xff]   ;;  %v1466_v35 = vld [vmem:[%s2209_s2 + $0x180] ss:$8 sps:$4 sm:$0xff]  }
   0xd   :  { %661 = vmatprep.subr.bf16.mxu1 %v1433_v13  ;;  %v1467_v36 = vld [vmem:[%s2209_s2 + $0x94] ss:$8 sps:$4 sm:$0xff]   ;;  %v1471_v38 = vld [vmem:[%s2209_s2 + $0x90] ss:$8 sps:$4 sm:$0xff]   ;;  %v1473_v40 = vld [vmem:[%s2209_s2 + $0xa4] ss:$8 sps:$4 sm:$0xff]  }
   0xe   :  { %v1469_v37 = vld [vmem:[%s2209_s2 + $0x194] ss:$8 sps:$4 sm:$0xff]   ;;  %v1472_v39 = vld [vmem:[%s2209_s2 + $0x190] ss:$8 sps:$4 sm:$0xff]   ;;  %v1475_v41 = vld [vmem:[%s2209_s2 + $0x1a4] ss:$8 sps:$4 sm:$0xff]  }
   0xf   :  { %621 = vmatpush1.bf16.msra.mxu0 %v1435_v14  ;;  %v1477_v42 = vld [vmem:[%s2209_s2 + $0xa0] ss:$8 sps:$4 sm:$0xff]   ;;  %v1479_v44 = vld [vmem:[%s2209_s2 + $0xb4] ss:$8 sps:$4 sm:$0xff]   ;;  %v1483_v47 = vld [vmem:[%s2209_s2 + $0xb0] ss:$8 sps:$4 sm:$0xff]  }
  0x10   :  { %662 = vmatpush1.bf16.msra.mxu1 %v1436_v15  ;;  %622 = vmatprep.subr.bf16.mxu0 %v1437_v16  ;;  %v1478_v43 = vld [vmem:[%s2209_s2 + $0x1a0] ss:$8 sps:$4 sm:$0xff]   ;;  %v1481_v45 = vld [vmem:[%s2209_s2 + $0x1b4] ss:$8 sps:$4 sm:$0xff]   ;;  %v1484_v48 = vld [vmem:[%s2209_s2 + $0x1b0] ss:$8 sps:$4 sm:$0xff]  }
  0x11   :  { %663 = vmatprep.subr.bf16.mxu1 %v1439_v17  ;;  %v27_v46 = vld [vmem:[%s2210_s0 + $0x8] sm:$0xff]  ;;  %v29_v50 = vld [vmem:[%s2210_s0 + $0x18] sm:$0xff]  ;;  %v26_v4 = vld [vmem:[%s2210_s0] sm:$0xff] }
  0x12   :  { %v33_v49 = vpack.c.bf16 %v27_v46, %v27_v46  ;;  %v1485_v51 = vld [vmem:[%s2209_s2 + $0xc4] ss:$8 sps:$4 sm:$0xff]   ;;  %v35_v52 = vpack.c.bf16 %v29_v50, %v29_v50  ;;  %v1489_v54 = vld [vmem:[%s2209_s2 + $0xc0] ss:$8 sps:$4 sm:$0xff]   ;;  %v1491_v56 = vld [vmem:[%s2209_s2 + $0xd4] ss:$8 sps:$4 sm:$0xff]   ;;  %v32_v8 = vpack.c.bf16 %v26_v4, %v26_v4 }
  0x13   :  { %623 = vmatpush1.bf16.msra.mxu0 %v1441_v18  ;;  %v1487_v53 = vld [vmem:[%s2209_s2 + $0x1c4] ss:$8 sps:$4 sm:$0xff]   ;;  %v1490_v55 = vld [vmem:[%s2209_s2 + $0x1c0] ss:$8 sps:$4 sm:$0xff]   ;;  %v1493_v57 = vld [vmem:[%s2209_s2 + $0x1d4] ss:$8 sps:$4 sm:$0xff]  }
  0x14   :  { %664 = vmatpush1.bf16.msra.mxu1 %v1442_v19  ;;  %624 = vmatprep.subr.bf16.mxu0 %v1443_v20  ;;  %v1495_v58 = vld [vmem:[%s2209_s2 + $0xd0] ss:$8 sps:$4 sm:$0xff]   ;;  %v1497_v60 = vld [vmem:[%s2209_s2 + $0xe4] ss:$8 sps:$4 sm:$0xff]   ;;  %v1501_v62 = vld [vmem:[%s2209_s2 + $0xe0] ss:$8 sps:$4 sm:$0xff]  }
  0x15   :  { %665 = vmatprep.subr.bf16.mxu1 %v1445_v21  ;;  %646 = vmatprep.mubr.bf16.mxu0 %v33_v49  ;;  %v1496_v59 = vld [vmem:[%s2209_s2 + $0x1d0] ss:$8 sps:$4 sm:$0xff]   ;;  %v1499_v61 = vld [vmem:[%s2209_s2 + $0x1e4] ss:$8 sps:$4 sm:$0xff]   ;;  %v1502_v63 = vld [vmem:[%s2209_s2 + $0x1e0] ss:$8 sps:$4 sm:$0xff]  }
  0x16   :  { %687 = vmatprep.mubr.bf16.mxu1 %v35_v52  ;;  %v1503_v0 = vld [vmem:[%s2209_s2 + $0xf4] ss:$8 sps:$4 sm:$0xff]   ;;  %v1507_v2 = vld [vmem:[%s2209_s2 + $0xf0] ss:$8 sps:$4 sm:$0xff]   ;;  %v1511_v6 = vld [vmem:[%s2209_s2 + $0x204] ss:$8 sps:$4 sm:$0xff]  }
  0x17   :  { %625 = vmatpush1.bf16.msra.mxu0 %v1447_v22  ;;  %v1505_v1 = vld [vmem:[%s2209_s2 + $0x1f4] ss:$8 sps:$4 sm:$0xff]   ;;  %v1508_v3 = vld [vmem:[%s2209_s2 + $0x1f0] ss:$8 sps:$4 sm:$0xff]   ;;  %v1514_v7 = vld [vmem:[%s2211_s3 + $0x4] ss:$8 sps:$4 sm:$0xff]  }
  0x18   :  { %666 = vmatpush1.bf16.msra.mxu1 %v1448_v23  ;;  %626 = vmatprep.subr.bf16.mxu0 %v1449_v24  ;;  %v28_v5 = vld [vmem:[%s2210_s0 + $0x10] sm:$0xff]  ;;  %v1509_v10 = vld [vmem:[%s2209_s2 + $0x200] ss:$8 sps:$4 sm:$0xff]   ;;  %v1523_v16 = vld [vmem:[%s2209_s2 + $0x224] ss:$8 sps:$4 sm:$0xff]  }
  0x19   :  { %667 = vmatprep.subr.bf16.mxu1 %v1451_v25  ;;  %v34_v9 = vpack.c.bf16 %v28_v5, %v28_v5  ;;  %v1512_v11 = vld [vmem:[%s2211_s3] ss:$8 sps:$4 sm:$0xff]   ;;  %v1517_v12 = vld [vmem:[%s2209_s2 + $0x214] ss:$8 sps:$4 sm:$0xff]   ;;  %v1515_v14 = vld [vmem:[%s2209_s2 + $0x210] ss:$8 sps:$4 sm:$0xff]  }
  0x1a   :  { %v1520_v13 = vld [vmem:[%s2211_s3 + $0x14] ss:$8 sps:$4 sm:$0xff]   ;;  %v1518_v15 = vld [vmem:[%s2211_s3 + $0x10] ss:$8 sps:$4 sm:$0xff]   ;;  %v1526_v17 = vld [vmem:[%s2211_s3 + $0x24] ss:$8 sps:$4 sm:$0xff]  }
  0x1b   :  { %627 = vmatpush1.bf16.msra.mxu0 %v1453_v26  ;;  %v1521_v18 = vld [vmem:[%s2209_s2 + $0x220] ss:$8 sps:$4 sm:$0xff]   ;;  %v1529_v20 = vld [vmem:[%s2209_s2 + $0x234] ss:$8 sps:$4 sm:$0xff]   ;;  %v1527_v22 = vld [vmem:[%s2209_s2 + $0x230] ss:$8 sps:$4 sm:$0xff]  }
  0x1c   :  { %668 = vmatpush1.bf16.msra.mxu1 %v1454_v27  ;;  %628 = vmatprep.subr.bf16.mxu0 %v1455_v28  ;;  %v1524_v19 = vld [vmem:[%s2211_s3 + $0x20] ss:$8 sps:$4 sm:$0xff]   ;;  %v1532_v21 = vld [vmem:[%s2211_s3 + $0x34] ss:$8 sps:$4 sm:$0xff]   ;;  %v1530_v23 = vld [vmem:[%s2211_s3 + $0x30] ss:$8 sps:$4 sm:$0xff]  }
  0x1d   :  { %669 = vmatprep.subr.bf16.mxu1 %v1457_v29  ;;  %v1535_v24 = vld [vmem:[%s2209_s2 + $0x244] ss:$8 sps:$4 sm:$0xff]   ;;  %v1533_v26 = vld [vmem:[%s2209_s2 + $0x240] ss:$8 sps:$4 sm:$0xff]   ;;  %v1541_v28 = vld [vmem:[%s2209_s2 + $0x254] ss:$8 sps:$4 sm:$0xff]  }
  0x1e   :  { %v1538_v25 = vld [vmem:[%s2211_s3 + $0x44] ss:$8 sps:$4 sm:$0xff]   ;;  %v1536_v27 = vld [vmem:[%s2211_s3 + $0x40] ss:$8 sps:$4 sm:$0xff]   ;;  %v1544_v29 = vld [vmem:[%s2211_s3 + $0x54] ss:$8 sps:$4 sm:$0xff]  }
  0x1f   :  { %629 = vmatpush1.bf16.msra.mxu0 %v1459_v30  ;;  %v1539_v30 = vld [vmem:[%s2209_s2 + $0x250] ss:$8 sps:$4 sm:$0xff]   ;;  %v1557_v46 = vld [vmem:[%s2209_s2 + $0x280] ss:$8 sps:$4 sm:$0xff]   ;;  %v1568_v49 = vld [vmem:[%s2211_s3 + $0x94] ss:$8 sps:$4 sm:$0xff]  }
  0x20   :  { %670 = vmatpush1.bf16.msra.mxu1 %v1460_v31  ;;  %630 = vmatprep.subr.bf16.mxu0 %v1461_v32  ;;  %v1542_v31 = vld [vmem:[%s2211_s3 + $0x50] ss:$8 sps:$4 sm:$0xff]   ;;  %v1547_v32 = vld [vmem:[%s2209_s2 + $0x264] ss:$8 sps:$4 sm:$0xff]  }
  0x21   :  { %671 = vmatprep.subr.bf16.mxu1 %v1463_v33  ;;  %v1550_v33 = vld [vmem:[%s2211_s3 + $0x64] ss:$8 sps:$4 sm:$0xff]   ;;  %v1563_v50 = vld [vmem:[%s2209_s2 + $0x290] ss:$8 sps:$4 sm:$0xff]  }
  0x22   :  { %v1571_v52 = vld [vmem:[%s2209_s2 + $0x2a4] ss:$8 sps:$4 sm:$0xff]  }
  0x23   :  { %631 = vmatpush1.bf16.msra.mxu0 %v1465_v34  ;;  %v31_v34 = vld [vmem:[%s2210_s0 + $0x28] sm:$0xff] }
  0x24   :  { %672 = vmatpush1.bf16.msra.mxu1 %v1466_v35  ;;  %632 = vmatprep.subr.bf16.mxu0 %v1467_v36  ;;  %v37_v35 = vpack.c.bf16 %v31_v34, %v31_v34  ;;  %v742_v36 = vld [vmem:[%s2212_s1 + $0x8] sm:$0xff]  ;;  %v1634_v34 = vld [vmem:[%s2213_s5 + $0x94] ss:$8 sps:$4 sm:$0xff]  }
  0x25   :  { %673 = vmatprep.subr.bf16.mxu1 %v1469_v37  ;;  %v1545_v37 = vld [vmem:[%s2209_s2 + $0x260] ss:$8 sps:$4 sm:$0xff]   ;;  %v1595_v4 = vld [vmem:[%s2209_s2 + $0x2e4] ss:$8 sps:$4 sm:$0xff]  }
  0x26   :  { %v1598_v5 = vld [vmem:[%s2211_s3 + $0xe4] ss:$8 sps:$4 sm:$0xff]  }
  0x27   :  { %633 = vmatpush1.bf16.msra.mxu0 %v1471_v38  ;;  %v1548_v38 = vld [vmem:[%s2211_s3 + $0x60] ss:$8 sps:$4 sm:$0xff]  }
  0x28   :  { %674 = vmatpush1.bf16.msra.mxu1 %v1472_v39  ;;  %634 = vmatprep.subr.bf16.mxu0 %v1473_v40  ;;  %v744_v39 = vpack.c.bf16 %v742_v36, %v742_v36  ;;  %v1553_v40 = vld [vmem:[%s2209_s2 + $0x274] ss:$8 sps:$4 sm:$0xff]   ;;  %v1637_v36 = vld [vmem:[%s2213_s5 + $0xa4] ss:$8 sps:$4 sm:$0xff]  }
  0x29   :  { %675 = vmatprep.subr.bf16.mxu1 %v1475_v41  ;;  %v1556_v41 = vld [vmem:[%s2211_s3 + $0x74] ss:$8 sps:$4 sm:$0xff]  }
  0x2b   :  { %635 = vmatpush1.bf16.msra.mxu0 %v1477_v42  ;;  %v1551_v42 = vld [vmem:[%s2209_s2 + $0x270] ss:$8 sps:$4 sm:$0xff]  }
  0x2c   :  { %676 = vmatpush1.bf16.msra.mxu1 %v1478_v43  ;;  %636 = vmatprep.subr.bf16.mxu0 %v1479_v44  ;;  %v1554_v43 = vld [vmem:[%s2211_s3 + $0x70] ss:$8 sps:$4 sm:$0xff]   ;;  %v1559_v44 = vld [vmem:[%s2209_s2 + $0x284] ss:$8 sps:$4 sm:$0xff]  }
  0x2d   :  { %677 = vmatprep.subr.bf16.mxu1 %v1481_v45  ;;  %v1562_v45 = vld [vmem:[%s2211_s3 + $0x84] ss:$8 sps:$4 sm:$0xff]  }
  0x2f   :  { %637 = vmatpush1.bf16.msra.mxu0 %v1483_v47  ;;  %v1560_v47 = vld [vmem:[%s2211_s3 + $0x80] ss:$8 sps:$4 sm:$0xff]  }
  0x30   :  { %678 = vmatpush1.bf16.msra.mxu1 %v1484_v48  ;;  %638 = vmatprep.subr.bf16.mxu0 %v1485_v51  ;;  %v1565_v48 = vld [vmem:[%s2209_s2 + $0x294] ss:$8 sps:$4 sm:$0xff]   ;;  %v1566_v51 = vld [vmem:[%s2211_s3 + $0x90] ss:$8 sps:$4 sm:$0xff]  }
  0x31   :  { %679 = vmatprep.subr.bf16.mxu1 %v1487_v53  ;;  %v1574_v53 = vld [vmem:[%s2211_s3 + $0xa4] ss:$8 sps:$4 sm:$0xff]  }
  0x33   :  { %639 = vmatpush1.bf16.msra.mxu0 %v1489_v54  ;;  %v1569_v54 = vld [vmem:[%s2209_s2 + $0x2a0] ss:$8 sps:$4 sm:$0xff]  }
  0x34   :  { %680 = vmatpush1.bf16.msra.mxu1 %v1490_v55  ;;  %640 = vmatprep.subr.bf16.mxu0 %v1491_v56  ;;  %v1572_v55 = vld [vmem:[%s2211_s3 + $0xa0] ss:$8 sps:$4 sm:$0xff]   ;;  %v1577_v56 = vld [vmem:[%s2209_s2 + $0x2b4] ss:$8 sps:$4 sm:$0xff]  }
  0x35   :  { %681 = vmatprep.subr.bf16.mxu1 %v1493_v57  ;;  %v1580_v57 = vld [vmem:[%s2211_s3 + $0xb4] ss:$8 sps:$4 sm:$0xff]  }
  0x37   :  { %641 = vmatpush1.bf16.msra.mxu0 %v1495_v58  ;;  %v1575_v58 = vld [vmem:[%s2209_s2 + $0x2b0] ss:$8 sps:$4 sm:$0xff]  }
  0x38   :  { %682 = vmatpush1.bf16.msra.mxu1 %v1496_v59  ;;  %642 = vmatprep.subr.bf16.mxu0 %v1497_v60  ;;  %v1578_v59 = vld [vmem:[%s2211_s3 + $0xb0] ss:$8 sps:$4 sm:$0xff]   ;;  %v1583_v60 = vld [vmem:[%s2209_s2 + $0x2c4] ss:$8 sps:$4 sm:$0xff]  }
  0x39   :  { %683 = vmatprep.subr.bf16.mxu1 %v1499_v61  ;;  %v1586_v61 = vld [vmem:[%s2211_s3 + $0xc4] ss:$8 sps:$4 sm:$0xff]  }
  0x3b   :  { %643 = vmatpush1.bf16.msra.mxu0 %v1501_v62  ;;  %v1581_v62 = vld [vmem:[%s2209_s2 + $0x2c0] ss:$8 sps:$4 sm:$0xff]  }
  0x3c   :  { %684 = vmatpush1.bf16.msra.mxu1 %v1502_v63  ;;  %644 = vmatprep.subr.bf16.mxu0 %v1503_v0  ;;  %v1584_v63 = vld [vmem:[%s2211_s3 + $0xc0] ss:$8 sps:$4 sm:$0xff]   ;;  %v1589_v0 = vld [vmem:[%s2209_s2 + $0x2d4] ss:$8 sps:$4 sm:$0xff]  }
  0x3d   :  { %685 = vmatprep.subr.bf16.mxu1 %v1505_v1  ;;  %v1592_v1 = vld [vmem:[%s2211_s3 + $0xd4] ss:$8 sps:$4 sm:$0xff]  }
  0x3f   :  { %645 = vmatpush1.bf16.msra.mxu0 %v1507_v2  ;;  %v1587_v2 = vld [vmem:[%s2209_s2 + $0x2d0] ss:$8 sps:$4 sm:$0xff]  }
  0x40   :  { %686 = vmatpush1.bf16.msra.mxu1 %v1508_v3  ;;  %696 = vmatprep.subr.bf16.mxu0 %v1511_v6  ;;  %v1590_v3 = vld [vmem:[%s2211_s3 + $0xd0] ss:$8 sps:$4 sm:$0xff]   ;;  %v1593_v6 = vld [vmem:[%s2209_s2 + $0x2e0] ss:$8 sps:$4 sm:$0xff]  }
  0x41   :  { %937 = vmatprep.subr.bf16.mxu1 %v1514_v7  ;;  %v1596_v7 = vld [vmem:[%s2211_s3 + $0xe0] ss:$8 sps:$4 sm:$0xff]  }
  0x42   :  { %647 = vmatmul.mubr.bf16.vlgmr.msra.gmra.mrb[0].mxu0 %v32_v8  ;;  %v1601_v8 = vld [vmem:[%s2209_s2 + $0x2f4] ss:$8 sps:$4 sm:$0xff]  }
  0x43   :  { %688 = vmatmul.mubr.bf16.vlgmr.msra.gmra.mrb[0].mxu1 %v34_v9  ;;  %697 = vmatpush1.bf16.msra.mxu0 %v1509_v10  ;;  %v1604_v9 = vld [vmem:[%s2211_s3 + $0xf4] ss:$8 sps:$4 sm:$0xff]   ;;  %v1599_v10 = vld [vmem:[%s2209_s2 + $0x2f0] ss:$8 sps:$4 sm:$0xff]  }
  0x44   :  { %938 = vmatpush1.bf16.msra.mxu1 %v1512_v11  ;;  %698 = vmatprep.subr.bf16.mxu0 %v1517_v12  ;;  %v1602_v11 = vld [vmem:[%s2211_s3 + $0xf0] ss:$8 sps:$4 sm:$0xff]   ;;  %v741_v12 = vld [vmem:[%s2212_s1] sm:$0xff] }
  0x45   :  { %939 = vmatprep.subr.bf16.mxu1 %v1520_v13  ;;  %728 = vmatprep.mubr.bf16.mxu0 %v37_v35  ;;  %v30_v13 = vld [vmem:[%s2210_s0 + $0x20] sm:$0xff]  ;;  %v1632_v35 = vld [vmem:[%s2213_s5 + $0x90] ss:$8 sps:$4 sm:$0xff]  }
  0x46   :  { %969 = vmatprep.mubr.bf16.mxu1 %v744_v39  ;;  %v1638_v39 = vld [vmem:[%s2213_s5 + $0xb0] ss:$8 sps:$4 sm:$0xff]  }
  0x47   :  { %699 = vmatpush1.bf16.msra.mxu0 %v1515_v14  ;;  %v743_v14 = vpack.c.bf16 %v741_v12, %v741_v12 }
  0x48   :  { %940 = vmatpush1.bf16.msra.mxu1 %v1518_v15  ;;  %700 = vmatprep.subr.bf16.mxu0 %v1523_v16  ;;  %v36_v15 = vpack.c.bf16 %v30_v13, %v30_v13  ;;  %v1605_v16 = vld [vmem:[%s2213_s5] ss:$8 sps:$4 sm:$0xff]  }
  0x49   :  { %941 = vmatprep.subr.bf16.mxu1 %v1526_v17  ;;  %v1607_v17 = vld [vmem:[%s2213_s5 + $0x4] ss:$8 sps:$4 sm:$0xff]  }
  0x4b   :  { %701 = vmatpush1.bf16.msra.mxu0 %v1521_v18  ;;  %v1610_v18 = vld [vmem:[%s2213_s5 + $0x14] ss:$8 sps:$4 sm:$0xff]  }
  0x4c   :  { %942 = vmatpush1.bf16.msra.mxu1 %v1524_v19  ;;  %702 = vmatprep.subr.bf16.mxu0 %v1529_v20  ;;  %v1608_v19 = vld [vmem:[%s2213_s5 + $0x10] ss:$8 sps:$4 sm:$0xff]   ;;  %v1613_v20 = vld [vmem:[%s2213_s5 + $0x24] ss:$8 sps:$4 sm:$0xff]  }
  0x4d   :  { %943 = vmatprep.subr.bf16.mxu1 %v1532_v21  ;;  %v1611_v21 = vld [vmem:[%s2213_s5 + $0x20] ss:$8 sps:$4 sm:$0xff]  }
  0x4f   :  { %703 = vmatpush1.bf16.msra.mxu0 %v1527_v22  ;;  %v1616_v22 = vld [vmem:[%s2213_s5 + $0x34] ss:$8 sps:$4 sm:$0xff]  }
  0x50   :  { %944 = vmatpush1.bf16.msra.mxu1 %v1530_v23  ;;  %704 = vmatprep.subr.bf16.mxu0 %v1535_v24  ;;  %v1614_v23 = vld [vmem:[%s2213_s5 + $0x30] ss:$8 sps:$4 sm:$0xff]   ;;  %v1619_v24 = vld [vmem:[%s2213_s5 + $0x44] ss:$8 sps:$4 sm:$0xff]  }
  0x51   :  { %945 = vmatprep.subr.bf16.mxu1 %v1538_v25  ;;  %v1617_v25 = vld [vmem:[%s2213_s5 + $0x40] ss:$8 sps:$4 sm:$0xff]  }
  0x53   :  { %705 = vmatpush1.bf16.msra.mxu0 %v1533_v26  ;;  %v1622_v26 = vld [vmem:[%s2213_s5 + $0x54] ss:$8 sps:$4 sm:$0xff]  }
  0x54   :  { %946 = vmatpush1.bf16.msra.mxu1 %v1536_v27  ;;  %706 = vmatprep.subr.bf16.mxu0 %v1541_v28  ;;  %v1620_v27 = vld [vmem:[%s2213_s5 + $0x50] ss:$8 sps:$4 sm:$0xff]   ;;  %v1625_v28 = vld [vmem:[%s2213_s5 + $0x64] ss:$8 sps:$4 sm:$0xff]  }
  0x55   :  { %947 = vmatprep.subr.bf16.mxu1 %v1544_v29  ;;  %v1623_v29 = vld [vmem:[%s2213_s5 + $0x60] ss:$8 sps:$4 sm:$0xff]  }
  0x57   :  { %707 = vmatpush1.bf16.msra.mxu0 %v1539_v30  ;;  %v1628_v30 = vld [vmem:[%s2213_s5 + $0x74] ss:$8 sps:$4 sm:$0xff]  }
  0x58   :  { %948 = vmatpush1.bf16.msra.mxu1 %v1542_v31  ;;  %708 = vmatprep.subr.bf16.mxu0 %v1547_v32  ;;  %v1626_v31 = vld [vmem:[%s2213_s5 + $0x70] ss:$8 sps:$4 sm:$0xff]   ;;  %v1631_v32 = vld [vmem:[%s2213_s5 + $0x84] ss:$8 sps:$4 sm:$0xff]  }
  0x59   :  { %949 = vmatprep.subr.bf16.mxu1 %v1550_v33  ;;  %v1629_v33 = vld [vmem:[%s2213_s5 + $0x80] ss:$8 sps:$4 sm:$0xff]  }
  0x5b   :  { %709 = vmatpush1.bf16.msra.mxu0 %v1545_v37  ;;  %v1635_v37 = vld [vmem:[%s2213_s5 + $0xa0] ss:$8 sps:$4 sm:$0xff]  }
  0x5c   :  { %950 = vmatpush1.bf16.msra.mxu1 %v1548_v38  ;;  %710 = vmatprep.subr.bf16.mxu0 %v1553_v40  ;;  %v1640_v38 = vld [vmem:[%s2213_s5 + $0xb4] ss:$8 sps:$4 sm:$0xff]   ;;  %v1643_v40 = vld [vmem:[%s2213_s5 + $0xc4] ss:$8 sps:$4 sm:$0xff]  }
  0x5d   :  { %951 = vmatprep.subr.bf16.mxu1 %v1556_v41  ;;  %v1641_v41 = vld [vmem:[%s2213_s5 + $0xc0] ss:$8 sps:$4 sm:$0xff]  }
  0x5f   :  { %711 = vmatpush1.bf16.msra.mxu0 %v1551_v42  ;;  %v1646_v42 = vld [vmem:[%s2213_s5 + $0xd4] ss:$8 sps:$4 sm:$0xff]  }
  0x60   :  { %952 = vmatpush1.bf16.msra.mxu1 %v1554_v43  ;;  %712 = vmatprep.subr.bf16.mxu0 %v1559_v44  ;;  %v1644_v43 = vld [vmem:[%s2213_s5 + $0xd0] ss:$8 sps:$4 sm:$0xff]   ;;  %v1649_v44 = vld [vmem:[%s2213_s5 + $0xe4] ss:$8 sps:$4 sm:$0xff]  }
  0x61   :  { %953 = vmatprep.subr.bf16.mxu1 %v1562_v45  ;;  %v1647_v45 = vld [vmem:[%s2213_s5 + $0xe0] ss:$8 sps:$4 sm:$0xff]  }
  0x63   :  { %713 = vmatpush1.bf16.msra.mxu0 %v1557_v46  ;;  %v1652_v46 = vld [vmem:[%s2213_s5 + $0xf4] ss:$8 sps:$4 sm:$0xff]  }
  0x64   :  { %954 = vmatpush1.bf16.msra.mxu1 %v1560_v47  ;;  %714 = vmatprep.subr.bf16.mxu0 %v1565_v48  ;;  %v1650_v47 = vld [vmem:[%s2213_s5 + $0xf0] ss:$8 sps:$4 sm:$0xff]  }
  0x65   :  { %955 = vmatprep.subr.bf16.mxu1 %v1568_v49 }
  0x67   :  { %715 = vmatpush1.bf16.msra.mxu0 %v1563_v50 }
  0x68   :  { %956 = vmatpush1.bf16.msra.mxu1 %v1566_v51  ;;  %716 = vmatprep.subr.bf16.mxu0 %v1571_v52 }
  0x69   :  { %957 = vmatprep.subr.bf16.mxu1 %v1574_v53 }
  0x6b   :  { %717 = vmatpush1.bf16.msra.mxu0 %v1569_v54 }
  0x6c   :  { %958 = vmatpush1.bf16.msra.mxu1 %v1572_v55  ;;  %718 = vmatprep.subr.bf16.mxu0 %v1577_v56 }
  0x6d   :  { %959 = vmatprep.subr.bf16.mxu1 %v1580_v57 }
  0x6f   :  { %719 = vmatpush1.bf16.msra.mxu0 %v1575_v58  ;;  %v986_v58 = vlaneseq }
  0x70   :  { %960 = vmatpush1.bf16.msra.mxu1 %v1578_v59  ;;  %720 = vmatprep.subr.bf16.mxu0 %v1583_v60 }
  0x71   :  { %961 = vmatprep.subr.bf16.mxu1 %v1586_v61  ;;  %v987_v59 = vshrl.u32 %v986_v58, 7  ;;  %v984_v61 = vld [vmem:[%s2214_s4] sm:$0x3] }
  0x73   :  { %721 = vmatpush1.bf16.msra.mxu0 %v1581_v62  ;;  %v988_v60 = vsub.s32 0, %v987_v59  ;;  %v992_v62 = vsub.s32 1, %v987_v59 }
  0x74   :  { %962 = vmatpush1.bf16.msra.mxu1 %v1584_v63  ;;  %722 = vmatprep.subr.bf16.mxu0 %v1589_v0 }
  0x75   :  { %963 = vmatprep.subr.bf16.mxu1 %v1592_v1 }
  0x77   :  { %723 = vmatpush1.bf16.msra.mxu0 %v1587_v2  ;;  %v989_v2 = vrot.slane %v984_v61, %v988_v60 }
  0x78   :  { %964 = vmatpush1.bf16.msra.mxu1 %v1590_v3  ;;  %724 = vmatprep.subr.bf16.mxu0 %v1595_v4 }
  0x79   :  { %965 = vmatprep.subr.bf16.mxu1 %v1598_v5 }
  0x7b   :  { %725 = vmatpush1.bf16.msra.mxu0 %v1593_v6  ;;  %v993_v6 = vrot.slane %v984_v61, %v992_v62 }
  0x7c   :  { %966 = vmatpush1.bf16.msra.mxu1 %v1596_v7  ;;  %726 = vmatprep.subr.bf16.mxu0 %v1601_v8 }
  0x7d   :  { %967 = vmatprep.subr.bf16.mxu1 %v1604_v9 }
  0x7f   :  { %727 = vmatpush1.bf16.msra.mxu0 %v1599_v10 }
  0x80   :  { %968 = vmatpush1.bf16.msra.mxu1 %v1602_v11  ;;  %1206 = vmatprep.subr.bf16.mxu0 %v1607_v17 }
  0x82   :  { %729 = vmatmul.mubr.bf16.vlgmr.msra.gmra.mrb[4].mxu0 %v36_v15 }
  0x83   :  { %970 = vmatmul.mubr.bf16.vlgmr.msra.gmra.mrb[4].mxu1 %v743_v14  ;;  %1207 = vmatpush1.bf16.msra.mxu0 %v1605_v16 }
  0x84   :  { %1208 = vmatprep.subr.bf16.mxu0 %v1610_v18 }
  0x87   :  { %1209 = vmatpush1.bf16.msra.mxu0 %v1608_v19  ;;  %v1034_v19 = vld [vmem:[%s2215_s6] sm:$0x3] }
  0x88   :  { %1210 = vmatprep.subr.bf16.mxu0 %v1613_v20  ;;  %v1039_v20 = vrot.slane %v1034_v19, %v988_v60 }
  0x8b   :  { %1211 = vmatpush1.bf16.msra.mxu0 %v1611_v21  ;;  %v1043_v21 = vrot.slane %v1034_v19, %v992_v62 }
  0x8c   :  { %1212 = vmatprep.subr.bf16.mxu0 %v1616_v22 }
  0x8f   :  { %1213 = vmatpush1.bf16.msra.mxu0 %v1614_v23 }
  0x90   :  { %1214 = vmatprep.subr.bf16.mxu0 %v1619_v24 }
  0x93   :  { %1215 = vmatpush1.bf16.msra.mxu0 %v1617_v25 }
  0x94   :  { %1216 = vmatprep.subr.bf16.mxu0 %v1622_v26 }
  0x97   :  { %1217 = vmatpush1.bf16.msra.mxu0 %v1620_v27 }
  0x98   :  { %1218 = vmatprep.subr.bf16.mxu0 %v1625_v28 }
  0x9b   :  { %1219 = vmatpush1.bf16.msra.mxu0 %v1623_v29 }
  0x9c   :  { %1220 = vmatprep.subr.bf16.mxu0 %v1628_v30 }
  0x9f   :  { %1221 = vmatpush1.bf16.msra.mxu0 %v1626_v31 }
  0xa0   :  { %1222 = vmatprep.subr.bf16.mxu0 %v1631_v32 }
  0xa3   :  { %1223 = vmatpush1.bf16.msra.mxu0 %v1629_v33 }
  0xa4   :  { %1224 = vmatprep.subr.bf16.mxu0 %v1634_v34 }
  0xa7   :  { %1225 = vmatpush1.bf16.msra.mxu0 %v1632_v35 }
  0xa8   :  { %1226 = vmatprep.subr.bf16.mxu0 %v1637_v36 }
  0xab   :  { %1227 = vmatpush1.bf16.msra.mxu0 %v1635_v37 }
  0xac   :  { %1228 = vmatprep.subr.bf16.mxu0 %v1640_v38 }
  0xaf   :  { %1229 = vmatpush1.bf16.msra.mxu0 %v1638_v39 }
  0xb0   :  { %1230 = vmatprep.subr.bf16.mxu0 %v1643_v40 }
  0xb3   :  { %1231 = vmatpush1.bf16.msra.mxu0 %v1641_v41 }
  0xb4   :  { %1232 = vmatprep.subr.bf16.mxu0 %v1646_v42 }
  0xb7   :  { %1233 = vmatpush1.bf16.msra.mxu0 %v1644_v43 }
  0xb8   :  { %1234 = vmatprep.subr.bf16.mxu0 %v1649_v44 }
  0xbb   :  { %1235 = vmatpush1.bf16.msra.mxu0 %v1647_v45 }
  0xbc   :  { %1236 = vmatprep.subr.bf16.mxu0 %v1652_v46 }
  0xbf   :  { %1237 = vmatpush1.bf16.msra.mxu0 %v1650_v47 }
 0x115   :  { %v648_v48 = vpop.f32.mrb[0].mxu0 }
 0x116   :  { %v689_v49 = vpop.f32.mrb[0].mxu1  ;;  %v650_v51 = vpop.f32.mrb[1].mxu0 }
 0x117   :  { %v690_v50 = vadd.f32 %v689_v49, %v648_v48  ;;  %v691_v52 = vpop.f32.mrb[1].mxu1  ;;  %v652_v54 = vpop.f32.mrb[2].mxu0 }
 0x118   :  { %v692_v53 = vadd.f32 %v691_v52, %v650_v51  ;;  %v693_v55 = vpop.f32.mrb[2].mxu1  ;;  %v653_v56 = vpop.f32.mrb[3].mxu0 }
 0x119   :  { %v694_v57 = vpop.f32.mrb[3].mxu1 }
 0x155   :  { %v730_v63 = vpop.f32.mrb[4].mxu0 }
 0x156   :  { %v971_v0 = vpop.f32.mrb[4].mxu1  ;;  %v731_v1 = vadd.f32 %v730_v63, %v690_v50  ;;  %v732_v3 = vpop.f32.mrb[5].mxu0 }
 0x157   :  { %v973_v4 = vpop.f32.mrb[5].mxu1  ;;  %v733_v5 = vadd.f32 %v732_v3, %v692_v53  ;;  %v734_v7 = vpop.f32.mrb[6].mxu0 }
 0x158   :  { %v975_v8 = vpop.f32.mrb[6].mxu1  ;;  %v978_v9 = vadd.f32 %v971_v0, %v731_v1  ;;  %v735_v10 = vpop.f32.mrb[7].mxu0 }
 0x159   :  { %v976_v11 = vpop.f32.mrb[7].mxu1  ;;  %v979_v12 = vadd.f32 %v973_v4, %v733_v5 }
 0x15a   :  { %v996_v13 = vadd.f32 %v989_v2, %v978_v9 }
 0x15b   :  { %v997_v14 = vadd.f32 %v993_v6, %v979_v12 }
 0x15c   :  { %v998_v15 = vmax.f32 %v996_v13, 0.0 }
 0x15d   :  { %v999_v16 = vmax.f32 %v997_v14, 0.0 }
 0x15e   :  { %v1000_v18 = vpack.c.bf16 %v998_v15, %v998_v15 }
 0x15f   :  { %v1001_v17 = vpack.c.bf16 %v999_v16, %v999_v16 }
 0x161   :  { %1238 = vmatprep.mubr.bf16.mxu0 %v1001_v17 }
 0x162   :  { %1239 = vmatmul.mubr.bf16.vlgmr.msra.gmra.mrb[8].mxu0 %v1000_v18 }
 0x235   :  { %v1240_v22 = vpop.f32.mrb[8].mxu0 }
 0x236   :  { %v1241_v23 = vadd.f32 %v1240_v22, %v1039_v20  ;;  %v1242_v24 = vpop.f32.mrb[9].mxu0 }
 0x237   :  { %v1243_v25 = vadd.f32 %v1242_v24, %v1043_v21  ;;  %v1244_v26 = vpop.f32.mrb[10].mxu0 }
 0x238   :  { %1247 = vst [vmem:[%s2216_s7] sm:$0xff] %v1241_v23  ;;  %v1245_v27 = vpop.f32.mrb[11].mxu0 }
 0x239   :  { %1248 = vst [vmem:[%s2216_s7 + $0x8] sm:$0xff] %v1243_v25 }

</bundles_post_ra>
